<compile_context>
chip_gen: v5e
topology: v5e:2x2
jax: 0.10.0
libtpu: 0.0.40
codegen_flags: <defaults>
</compile_context>

<pallas_src>
import functools

import jax
import jax.numpy as jnp
from jax.experimental import pallas as pl
from jax.experimental.pallas import tpu as pltpu


def _round_up(x, m):
    return ((x + m - 1) // m) * m


def _fit_tile(n, pref, min_tiles=1):
    """Largest multiple of 128 dividing n, <= pref, and (when possible) leaving
    at least `min_tiles` tiles along the axis. n must be a multiple of 128."""
    cap = max(128, ((n // max(min_tiles, 1)) // 128) * 128)
    t = max(128, min(pref, cap))
    while n % t != 0:
        t -= 128
    return t


def _pick_vmem_limit(requested=None):
    """Generation-aware scoped-VMEM request (bytes)."""
    if requested is not None:
        return int(requested)
    try:
        info = pltpu.get_tpu_info()
        cap = 0
        for name in ("vmem_capacity_bytes", "vmem_size_bytes", "vmem_bytes"):
            v = getattr(info, name, None)
            if v:
                cap = int(v)
                break
        if cap >= 32 * 1024 * 1024:
            # ~48 MiB on v7x (64 MiB physical), ~96 MiB on v5e/v6e (128 MiB).
            return int(min(cap - 16 * 1024 * 1024, (cap * 3) // 4))
    except Exception:
        pass
    return 48 * 1024 * 1024


def _masked_log_softmax(logits_f32, num_classes):
    """log_softmax over the last dim with padded class lanes masked out.
    Only safe in f32 (the -1e30 mask would overflow in bf16)."""
    lane = jax.lax.broadcasted_iota(jnp.int32, logits_f32.shape, 1)
    logits = jnp.where(lane < num_classes, logits_f32, -1e30)
    m = jnp.max(logits, axis=-1, keepdims=True)
    z = logits - m
    lse = jnp.log(jnp.sum(jnp.exp(z), axis=-1, keepdims=True))
    return z - lse


# ---------------------------------------------------------------------------
# FUSED path: one kernel, everything VMEM-resident (small/medium graphs).
# OUT = log_softmax( relu(A @ relu(relu(A @ X) @ W1 + b1)) @ W2 + b2 )
# ---------------------------------------------------------------------------
def _fused_kernel(a_ref, x_ref, w1_ref, b1_ref, w2_ref, b2_ref, o_ref, *, num_classes):
    a = a_ref[...]                                                   # bf16 (Np, Np)
    # conv1 -> relu -> lin1 -> relu
    h = jnp.dot(a, x_ref[...], preferred_element_type=jnp.float32)
    h = jnp.maximum(h, 0.0)
    h = jnp.dot(h.astype(w1_ref.dtype), w1_ref[...],
                preferred_element_type=jnp.float32) + b1_ref[...]
    h = jnp.maximum(h, 0.0)
    # conv2 -> relu -> lin2 -> log_softmax (no H1 HBM round-trip)
    h2 = jnp.dot(a, h.astype(a.dtype), preferred_element_type=jnp.float32)
    h2 = jnp.maximum(h2, 0.0)
    logits = jnp.dot(h2.astype(w2_ref.dtype), w2_ref[...],
                     preferred_element_type=jnp.float32) + b2_ref[...]
    o_ref[...] = _masked_log_softmax(logits, num_classes)


# ---------------------------------------------------------------------------
# GRIDDED path, stage 1: H1 = relu( relu(A @ X) @ W1 + b1 )
# grid = (row tiles i [parallel], K tiles k [arbitrary, last]).
# ---------------------------------------------------------------------------
def _stage1_kernel(a_ref, x_ref, w1_ref, b1_ref, h_ref, acc_ref, *, x_resident, tk):
    k = pl.program_id(1)

    @pl.when(k == 0)
    def _():
        acc_ref[...] = jnp.zeros_like(acc_ref)

    if x_resident:
        x_blk = x_ref[pl.ds(pl.multiple_of(k * tk, 128), tk), :]
    else:
        x_blk = x_ref[...]
    acc_ref[...] += jnp.dot(a_ref[...], x_blk, preferred_element_type=jnp.float32)

    @pl.when(k == pl.num_programs(1) - 1)
    def _():
        w1 = w1_ref[...]
        h = jnp.maximum(acc_ref[...], 0.0)                           # relu(conv1)
        h = jnp.dot(h.astype(w1.dtype), w1,
                    preferred_element_type=jnp.float32) + b1_ref[...]
        h_ref[...] = jnp.maximum(h, 0.0).astype(h_ref.dtype)         # relu(lin1)


# ---------------------------------------------------------------------------
# GRIDDED path, stage 2: OUT = log_softmax( relu(A @ H1) @ W2 + b2 )
# ---------------------------------------------------------------------------
def _stage2_kernel(a_ref, h_ref, w2_ref, b2_ref, o_ref, acc_ref,
                   *, num_classes, h_resident, tk):
    k = pl.program_id(1)

    @pl.when(k == 0)
    def _():
        acc_ref[...] = jnp.zeros_like(acc_ref)

    if h_resident:
        h_blk = h_ref[pl.ds(pl.multiple_of(k * tk, 128), tk), :]
    else:
        h_blk = h_ref[...]
    acc_ref[...] += jnp.dot(a_ref[...], h_blk, preferred_element_type=jnp.float32)

    @pl.when(k == pl.num_programs(1) - 1)
    def _():
        w2 = w2_ref[...]
        h = jnp.maximum(acc_ref[...], 0.0)                           # relu(conv2)
        logits = jnp.dot(h.astype(w2.dtype), w2,
                         preferred_element_type=jnp.float32) + b2_ref[...]
        o_ref[...] = _masked_log_softmax(logits, num_classes)


def lightgcn_forward(a_hat, x, w1, b1, w2, b2, *,
                     num_nodes=None,
                     compute_dtype=jnp.bfloat16,
                     tm_pref=512, tk_pref=2048,
                     fused=None,
                     vmem_limit_bytes=None):
    """LightGCN forward (eval mode).

    a_hat: (Np, Np) dense D^-1/2 A D^-1/2, already 128-padded (any float dtype;
           build it directly in `compute_dtype` to avoid an extra cast pass).
    x: (N, F); w1: (F, H); b1: (1, H); w2: (H, C); b2: (1, C).
    Returns (N, C) float32 log-probabilities.
    """
    N, F = x.shape
    if num_nodes is None:
        num_nodes = N
    H = w1.shape[1]
    C = w2.shape[1]

    Np = a_hat.shape[0]
    assert a_hat.shape == (Np, Np) and Np % 128 == 0 and Np >= N, a_hat.shape
    Fp = _round_up(F, 128)
    Hp = _round_up(H, 128)
    Cp = _round_up(C, 128)

    def pad2(m, r, c, dt):
        return jnp.pad(m, ((0, r - m.shape[0]), (0, c - m.shape[1]))).astype(dt)

    a_p = a_hat.astype(compute_dtype)            # no-op when built in bf16 already
    x_p = pad2(x, Np, Fp, compute_dtype)
    w1_p = pad2(w1, Fp, Hp, compute_dtype)
    b1_p = pad2(b1, 1, Hp, jnp.float32)
    w2_p = pad2(w2, Hp, Cp, compute_dtype)
    b2_p = pad2(b2, 1, Cp, jnp.float32)

    itemsize = jnp.dtype(compute_dtype).itemsize
    vmem_limit = _pick_vmem_limit(vmem_limit_bytes)

    if fused is None:
        # Conservative fused-path footprint: inputs possibly double-buffered by
        # the runtime + f32 intermediates materialized by the compiler.
        est = (2 * (Np * Np + Np * Fp + Fp * Hp + Hp * Cp) * itemsize
               + 2 * Np * Cp * 4
               + 4 * (Np * Fp + 2 * Np * Hp + Np * Cp))
        fused = est <= int(vmem_limit * 0.7)

    if fused:
        out_p = pl.pallas_call(
            functools.partial(_fused_kernel, num_classes=C),
            out_shape=jax.ShapeDtypeStruct((Np, Cp), jnp.float32),
            compiler_params=pltpu.CompilerParams(vmem_limit_bytes=vmem_limit),
            cost_estimate=pl.CostEstimate(
                flops=2 * Np * Np * (Fp + Hp) + 2 * Np * Fp * Hp + 2 * Np * Hp * Cp,
                transcendentals=Np * Cp,
                bytes_accessed=(Np * Np + Np * Fp + Fp * Hp + Hp * Cp) * itemsize
                               + (Hp + Cp) * 4 + Np * Cp * 4,
            ),
        )(a_p, x_p, w1_p, b1_p, w2_p, b2_p)
        return out_p[:num_nodes, :C]

    # ---------------- gridded two-stage path (large graphs) -----------------
    tm = _fit_tile(Np, tm_pref, min_tiles=2)     # >=2 row tiles -> v7x megacore
    tk = _fit_tile(Np, tk_pref)
    grid = (Np // tm, Np // tk)
    n_row_tiles = grid[0]

    cparams = pltpu.CompilerParams(
        dimension_semantics=("parallel", "arbitrary"),
        vmem_limit_bytes=vmem_limit,
    )

    # Keep the dense reduction operand fully VMEM-resident when it fits
    # (removes its per-row-tile re-streaming from the HBM-bound A stream).
    x_res = 2 * Np * Fp * itemsize <= vmem_limit // 4
    h_res = 2 * Np * Hp * itemsize <= vmem_limit // 4

    # ---- stage 1: H1 = relu(relu(A @ X) @ W1 + b1) -------------------------
    x_spec = (pl.BlockSpec((Np, Fp), lambda i, k: (0, 0)) if x_res
              else pl.BlockSpec((tk, Fp), lambda i, k: (k, 0)))
    h1 = pl.pallas_call(
        functools.partial(_stage1_kernel, x_resident=x_res, tk=tk),
        out_shape=jax.ShapeDtypeStruct((Np, Hp), compute_dtype),
        grid_spec=pltpu.PrefetchScalarGridSpec(
            num_scalar_prefetch=0,
            grid=grid,
            in_specs=[
                pl.BlockSpec((tm, tk), lambda i, k: (i, k)),   # A_hat tile
                x_spec,                                        # X (resident or streamed)
                pl.BlockSpec((Fp, Hp), lambda i, k: (0, 0)),   # W1
                pl.BlockSpec((1, Hp), lambda i, k: (0, 0)),    # b1
            ],
            out_specs=pl.BlockSpec((tm, Hp), lambda i, k: (i, 0)),
            scratch_shapes=[pltpu.VMEM((tm, Fp), jnp.float32)],
        ),
        compiler_params=cparams,
        cost_estimate=pl.CostEstimate(
            flops=2 * Np * Np * Fp + 2 * Np * Fp * Hp,
            transcendentals=0,
            bytes_accessed=(Np * Np
                            + Np * Fp * (1 if x_res else n_row_tiles)
                            + Fp * Hp + Np * Hp) * itemsize + Hp * 4,
        ),
    )(a_p, x_p, w1_p, b1_p)

    # ---- stage 2: OUT = log_softmax(relu(A @ H1) @ W2 + b2) ----------------
    h_spec = (pl.BlockSpec((Np, Hp), lambda i, k: (0, 0)) if h_res
              else pl.BlockSpec((tk, Hp), lambda i, k: (k, 0)))
    out_p = pl.pallas_call(
        functools.partial(_stage2_kernel, num_classes=C, h_resident=h_res, tk=tk),
        out_shape=jax.ShapeDtypeStruct((Np, Cp), jnp.float32),
        grid_spec=pltpu.PrefetchScalarGridSpec(
            num_scalar_prefetch=0,
            grid=grid,
            in_specs=[
                pl.BlockSpec((tm, tk), lambda i, k: (i, k)),   # A_hat tile
                h_spec,                                        # H1 (resident or streamed)
                pl.BlockSpec((Hp, Cp), lambda i, k: (0, 0)),   # W2
                pl.BlockSpec((1, Cp), lambda i, k: (0, 0)),    # b2
            ],
            out_specs=pl.BlockSpec((tm, Cp), lambda i, k: (i, 0)),
            scratch_shapes=[pltpu.VMEM((tm, Hp), jnp.float32)],
        ),
        compiler_params=cparams,
        cost_estimate=pl.CostEstimate(
            flops=2 * Np * Np * Hp + 2 * Np * Hp * Cp,
            transcendentals=Np * Cp,
            bytes_accessed=(Np * Np
                            + Np * Hp * (1 if h_res else n_row_tiles)
                            + Hp * Cp) * itemsize + Cp * 4 + Np * Cp * 4,
        ),
    )(a_p, h1, w2_p, b2_p)

    return out_p[:num_nodes, :C]


def build_normalized_adjacency(edge_index, num_nodes, padded_num_nodes=None,
                               dtype=jnp.float32):
    """Dense D^{-1/2} A D^{-1/2} matching PyG LGConv's gcn_norm(add_self_loops=False),
    emitted directly at the padded shape / target dtype (no extra pad+cast pass).

    NOTE: degree is computed from the target index only, which is correct
    because the caller passes an explicitly symmetrized edge list.
    """
    if padded_num_nodes is None:
        padded_num_nodes = num_nodes
    row, col = edge_index[0], edge_index[1]          # row = source j, col = target i
    ones = jnp.ones(row.shape[0], dtype=jnp.float32)
    deg = jnp.zeros((num_nodes,), jnp.float32).at[col].add(ones)
    dinv = jnp.where(deg > 0, jax.lax.rsqrt(jnp.maximum(deg, 1e-12)), 0.0)
    norm = (dinv[row] * dinv[col]).astype(dtype)
    # out[i] = sum_{(j->i)} norm * x[j]   =>   A_hat[i, j] += norm
    a_hat = (jnp.zeros((padded_num_nodes, padded_num_nodes), dtype)
             .at[col, row].add(norm))
    return a_hat


if __name__ == "__main__":
    key = jax.random.PRNGKey(0)

    # Small shapes implied by the module.
    num_nodes = 64           # N
    num_node_features = 16   # data.num_node_features
    hid_size = 32            # args.hid_size
    num_classes = 8          # data.num_classes

    k_x, k_e, k_w1, k_b1, k_w2, k_b2 = jax.random.split(key, 6)

    # Node features.
    x = jax.random.normal(k_x, (num_nodes, num_node_features), dtype=jnp.float32)

    # Deterministic small graph: ring + a few random chords, made undirected.
    src_ring = jnp.arange(num_nodes, dtype=jnp.int32)
    dst_ring = (src_ring + 1) % num_nodes
    rand_pairs = jax.random.randint(k_e, (2, 32), 0, num_nodes, dtype=jnp.int32)
    src = jnp.concatenate([src_ring, rand_pairs[0]])
    dst = jnp.concatenate([dst_ring, rand_pairs[1]])
    edge_index = jnp.stack(
        [jnp.concatenate([src, dst]), jnp.concatenate([dst, src])], axis=0
    )  # (2, E) with both directions

    # Deterministic parameter init (uniform, like torch Linear default range).
    lim1 = 1.0 / jnp.sqrt(num_node_features)
    w1 = jax.random.uniform(k_w1, (num_node_features, hid_size),
                            minval=-lim1, maxval=lim1, dtype=jnp.float32)
    b1 = jax.random.uniform(k_b1, (1, hid_size),
                            minval=-lim1, maxval=lim1, dtype=jnp.float32)
    lim2 = 1.0 / jnp.sqrt(hid_size)
    w2 = jax.random.uniform(k_w2, (hid_size, num_classes),
                            minval=-lim2, maxval=lim2, dtype=jnp.float32)
    b2 = jax.random.uniform(k_b2, (1, num_classes),
                            minval=-lim2, maxval=lim2, dtype=jnp.float32)

    # Build A_hat once, directly at the 128-padded shape in the compute dtype.
    Np = _round_up(num_nodes, 128)
    a_hat_bf16 = build_normalized_adjacency(edge_index, num_nodes, Np, jnp.bfloat16)

    # Path 1: fused single-kernel (auto-selected for this graph size).
    out_fused = jax.block_until_ready(
        lightgcn_forward(a_hat_bf16, x, w1, b1, w2, b2, num_nodes=num_nodes))
    # Path 2: gridded two-stage pipeline (large-graph path), exercised here too.
    out_grid = jax.block_until_ready(
        lightgcn_forward(a_hat_bf16, x, w1, b1, w2, b2, num_nodes=num_nodes,
                         fused=False))

    # Sanity: pure-JAX f32 reference (kernels use bf16 MXU inputs with f32
    # accumulation, so tolerance is looser than a pure-f32 check).
    a_hat_f32 = build_normalized_adjacency(edge_index, num_nodes, num_nodes,
                                           jnp.float32)

    def ref(a, xv):
        h = jnp.maximum(a @ xv, 0.0)
        h = jnp.maximum(h @ w1 + b1, 0.0)
        h = jnp.maximum(a @ h, 0.0)
        logits = h @ w2 + b2
        return jax.nn.log_softmax(logits, axis=-1)

    ref_out = ref(a_hat_f32, x)
    assert out_fused.shape == (num_nodes, num_classes)
    assert out_grid.shape == (num_nodes, num_classes)
    err_fused = float(jnp.max(jnp.abs(out_fused - ref_out)))
    err_grid = float(jnp.max(jnp.abs(out_grid - ref_out)))
    assert err_fused < 1e-1, f"fused path max abs err vs f32 reference: {err_fused}"
    assert err_grid < 1e-1, f"gridded path max abs err vs f32 reference: {err_grid}"

    print("KERNEL_OK")
</pallas_src>

<mosaic_0001>
module attributes {stable_mosaic.version = 11 : i64} {
  func.func @_fused_kernel(%arg0: memref<128x128xbf16, #tpu.memory_space<vmem>>, %arg1: memref<128x128xbf16, #tpu.memory_space<vmem>>, %arg2: memref<128x128xbf16, #tpu.memory_space<vmem>>, %arg3: memref<1x128xf32, #tpu.memory_space<vmem>>, %arg4: memref<128x128xbf16, #tpu.memory_space<vmem>>, %arg5: memref<1x128xf32, #tpu.memory_space<vmem>>, %arg6: memref<128x128xf32, #tpu.memory_space<vmem>>) attributes {dimension_semantics = [], scalar_prefetch = 0 : i64, scratch_operands = 0 : i64, tpu.core_type = #tpu.core_type<tc>} {
    %c0 = arith.constant 0 : index
    %c0_0 = arith.constant 0 : index
    %0 = vector.load %arg0[%c0, %c0_0] : memref<128x128xbf16, #tpu.memory_space<vmem>>, vector<128x128xbf16>
    %c0_1 = arith.constant 0 : index
    %c0_2 = arith.constant 0 : index
    %1 = vector.load %arg1[%c0_1, %c0_2] : memref<128x128xbf16, #tpu.memory_space<vmem>>, vector<128x128xbf16>
    %cst = arith.constant dense<0.000000e+00> : vector<128x128xf32>
    %2 = tpu.matmul %0, %1, %cst {dimension_numbers = #tpu.dot_dimension_numbers<[1], [0], [0], [1], [0, 0, 1, 1], [], []>} : vector<128x128xbf16>, vector<128x128xbf16>, vector<128x128xf32> -> vector<128x128xf32>
    %cst_3 = arith.constant 0.000000e+00 : f32
    %3 = vector.broadcast %cst_3 : f32 to vector<128x128xf32>
    %4 = arith.maximumf %2, %3 : vector<128x128xf32>
    %5 = arith.truncf %4 : vector<128x128xf32> to vector<128x128xbf16>
    %c0_4 = arith.constant 0 : index
    %c0_5 = arith.constant 0 : index
    %6 = vector.load %arg2[%c0_4, %c0_5] : memref<128x128xbf16, #tpu.memory_space<vmem>>, vector<128x128xbf16>
    %cst_6 = arith.constant dense<0.000000e+00> : vector<128x128xf32>
    %7 = tpu.matmul %5, %6, %cst_6 {dimension_numbers = #tpu.dot_dimension_numbers<[1], [0], [0], [1], [0, 0, 1, 1], [], []>} : vector<128x128xbf16>, vector<128x128xbf16>, vector<128x128xf32> -> vector<128x128xf32>
    %c0_7 = arith.constant 0 : index
    %c0_8 = arith.constant 0 : index
    %8 = vector.load %arg3[%c0_7, %c0_8] : memref<1x128xf32, #tpu.memory_space<vmem>>, vector<1x128xf32>
    %9 = vector.broadcast %8 : vector<1x128xf32> to vector<128x128xf32>
    %10 = arith.addf %7, %9 : vector<128x128xf32>
    %cst_9 = arith.constant 0.000000e+00 : f32
    %11 = vector.broadcast %cst_9 : f32 to vector<128x128xf32>
    %12 = arith.maximumf %10, %11 : vector<128x128xf32>
    %13 = arith.truncf %12 : vector<128x128xf32> to vector<128x128xbf16>
    %cst_10 = arith.constant dense<0.000000e+00> : vector<128x128xf32>
    %14 = tpu.matmul %0, %13, %cst_10 {dimension_numbers = #tpu.dot_dimension_numbers<[1], [0], [0], [1], [0, 0, 1, 1], [], []>} : vector<128x128xbf16>, vector<128x128xbf16>, vector<128x128xf32> -> vector<128x128xf32>
    %cst_11 = arith.constant 0.000000e+00 : f32
    %15 = vector.broadcast %cst_11 : f32 to vector<128x128xf32>
    %16 = arith.maximumf %14, %15 : vector<128x128xf32>
    %17 = arith.truncf %16 : vector<128x128xf32> to vector<128x128xbf16>
    %c0_12 = arith.constant 0 : index
    %c0_13 = arith.constant 0 : index
    %18 = vector.load %arg4[%c0_12, %c0_13] : memref<128x128xbf16, #tpu.memory_space<vmem>>, vector<128x128xbf16>
    %cst_14 = arith.constant dense<0.000000e+00> : vector<128x128xf32>
    %19 = tpu.matmul %17, %18, %cst_14 {dimension_numbers = #tpu.dot_dimension_numbers<[1], [0], [0], [1], [0, 0, 1, 1], [], []>} : vector<128x128xbf16>, vector<128x128xbf16>, vector<128x128xf32> -> vector<128x128xf32>
    %c0_15 = arith.constant 0 : index
    %c0_16 = arith.constant 0 : index
    %20 = vector.load %arg5[%c0_15, %c0_16] : memref<1x128xf32, #tpu.memory_space<vmem>>, vector<1x128xf32>
    %21 = vector.broadcast %20 : vector<1x128xf32> to vector<128x128xf32>
    %22 = arith.addf %19, %21 : vector<128x128xf32>
    %23 = tpu.iota {dimensions = array<i32: 1>} : vector<128x128xi32>
    %c8_i32 = arith.constant 8 : i32
    %24 = vector.broadcast %c8_i32 : i32 to vector<128x128xi32>
    %25 = arith.cmpi slt, %23, %24 : vector<128x128xi32>
    %cst_17 = arith.constant -1.000000e+30 : f32
    %26 = vector.broadcast %cst_17 : f32 to vector<128x128xf32>
    %27 = arith.select %25, %22, %26 : vector<128x128xi1>, vector<128x128xf32>
    %cst_18 = arith.constant dense<0xFF800000> : vector<128xf32>
    %28 = vector.multi_reduction <maximumf>, %27, %cst_18 [1] : vector<128x128xf32> to vector<128xf32>
    %29 = vector.shape_cast %28 : vector<128xf32> to vector<128x1xf32>
    %30 = vector.broadcast %29 : vector<128x1xf32> to vector<128x128xf32>
    %31 = arith.subf %27, %30 : vector<128x128xf32>
    %32 = math.exp %31 : vector<128x128xf32>
    %cst_19 = arith.constant dense<0.000000e+00> : vector<128xf32>
    %33 = vector.multi_reduction <add>, %32, %cst_19 [1] : vector<128x128xf32> to vector<128xf32>
    %34 = vector.shape_cast %33 : vector<128xf32> to vector<128x1xf32>
    %35 = math.log %34 : vector<128x1xf32>
    %36 = vector.broadcast %35 : vector<128x1xf32> to vector<128x128xf32>
    %37 = arith.subf %31, %36 : vector<128x128xf32>
    %c0_20 = arith.constant 0 : index
    %c0_21 = arith.constant 0 : index
    %38 = vector.load %arg6[%c0_20, %c0_21] : memref<128x128xf32, #tpu.memory_space<vmem>>, vector<128x128xf32>
    tpu.vector_store %arg6[%c0_20, %c0_21], %37 {strides = array<i32>} : memref<128x128xf32, #tpu.memory_space<vmem>>, vector<128x128xf32>,
    return
  }
}

</mosaic_0001>

<bundles_post_ra>
// kernel: tpu_custom_call.1
= control target key start
LH: loop header
LB: loop body
LE: loop exit
PB: predicated region body
PF: predicated region fallthrough
CT: control target
= control target key end

     0   :  { %11 = vsyncpa [#allocation3], 0  ;;  %s1472_s0 = inlined_call_operand.hbm [shape: bf16[128,128], index: 0, kind: input, shape index: {}]   ;;  %s1473_s1 = inlined_call_operand.hbm [shape: bf16[128,128], index: 1, kind: input, shape index: {}]   ;;  %s1474_s2 = inlined_call_operand.hbm [shape: bf16[128,128], index: 2, kind: input, shape index: {}]   ;;  %s1475_s3 = inlined_call_operand.vmem [shape: f32[1,128], index: 3, kind: input, shape index: {}]   ;;  %s1476_s4 = inlined_call_operand.hbm [shape: bf16[128,128], index: 4, kind: input, shape index: {}]   ;;  %s1477_s5 = inlined_call_operand.vmem [shape: f32[1,128], index: 5, kind: input, shape index: {}]   ;;  %s1478_s6 = inlined_call_operand.hbm [shape: f32[128,128], index: 6, kind: output, shape index: {}]  }
   0x1   :  { %12 = vsyncpa [#allocation6], 0 }
   0x2   :  { %13 = vsyncpa [#allocation9], 0 }
   0x3   :  { %14 = vsyncpa [#allocation4], 0  ;;  %s32_s23 = sshll.u32 %s1473_s1, 4  ;;  %s1198_s24 = smov [#allocation5]   ;;  %s33_s23 = int_to_ptr.hbm [resolvable:$true] %s32_s23 }
   0x4   :  { %s34_s25 = sshll.u32 %s1198_s24, 4  ;;  %s19_s28 = sshll.u32 %s1472_s0, 4  ;;  %s35_s25 = int_to_ptr.vmem [resolvable:$true] %s34_s25  ;;  %s20_s28 = int_to_ptr.hbm [resolvable:$true] %s19_s28 }
   0x5   :  { %s1199_s29 = smov 64   ;;  %s1200_s30 = smov 4  }
   0x6   :  { %40 = dma.hbm_to_vmem [thread:$0]  %s33_s23, 1024, %s35_s25, [#allocation6], %s1199_s29, %s1199_s29, %s1200_s30  }
   0x7   :  { %s1201_s7 = smov [#allocation2]   ;;  %s45_s11 = sshll.u32 %s1474_s2, 4  ;;  %s46_s11 = int_to_ptr.hbm [resolvable:$true] %s45_s11 }
   0x8   :  { %s21_s8 = sshll.u32 %s1201_s7, 4  ;;  %s60_s13 = sshll.u32 %s1476_s4, 4  ;;  %s22_s8 = int_to_ptr.vmem [resolvable:$true] %s21_s8  ;;  %s61_s13 = int_to_ptr.hbm [resolvable:$true] %s60_s13 }
   0x9   :  { %27 = dma.hbm_to_vmem [thread:$0]  %s20_s28, 1024, %s22_s8, [#allocation3], %s1199_s29, %s1199_s29, %s1200_s30  }
   0xa   :  { %s1202_s14 = smov [#allocation7]   ;;  %s1203_s0 = smov [#allocation8]  }
   0xb   :  { %s47_s15 = sshll.u32 %s1202_s14, 4  ;;  %s62_s16 = sshll.u32 %s1203_s0, 4  ;;  %s48_s15 = int_to_ptr.vmem [resolvable:$true] %s47_s15  ;;  %s63_s16 = int_to_ptr.vmem [resolvable:$true] %s62_s16 }
   0xc   :  { %53 = dma.hbm_to_vmem [thread:$0]  %s46_s11, 1024, %s48_s15, [#allocation6], %s1199_s29, %s1199_s29, %s1200_s30  }
   0xd   :  { %68 = dma.hbm_to_vmem [thread:$0]  %s61_s13, 1024, %s63_s16, [#allocation9], %s1199_s29, %s1199_s29, %s1200_s30  }
   0xe   :  { %1190 = dma.done.wait [#allocation3], 1024  }
   0xf   :  { %1191 = vsyncadd [#allocation3], 4294966272 }
  0x10   :  { %1192 = dma.done.wait [#allocation6], 2048  }
  0x11   :  { %1193 = vsyncadd [#allocation6], 4294965248 }
  0x12   :  { %1194 = dma.done.wait [#allocation9], 1024  }
  0x13   :  { %1195 = vsyncadd [#allocation9], 4294966272  ;;  %v978_v0 = vld [vmem:[#allocation5 + $0x38] sm:$0xff]  ;;  %v977_v1 = vld [vmem:[#allocation5 + $0x30] sm:$0xff]  ;;  %s820_s21 = sshll.u32 %s1478_s6, 4  ;;  %s1205_s22 = smov 128   ;;  %s821_s21 = int_to_ptr.hbm [resolvable:$true] %s820_s21 }
  0x14   :  { %215 = vmatpush.bf16.msra.mxu0 %v978_v0  ;;  %v976_v2 = vld [vmem:[#allocation5 + $0x28] sm:$0xff]  ;;  %v975_v3 = vld [vmem:[#allocation5 + $0x20] sm:$0xff]  ;;  %v974_v4 = vld [vmem:[#allocation5 + $0x18] sm:$0xff]  ;;  %s1206_s23 = smov 8  }
  0x15   :  { %v973_v5 = vld [vmem:[#allocation5 + $0x10] sm:$0xff]  ;;  %v972_v6 = vld [vmem:[#allocation5 + $0x8] sm:$0xff]  ;;  %v971_v7 = vld [vmem:[#allocation5] sm:$0xff] }
  0x16   :  { %v1254_v8 = vld [vmem:[#allocation2] sm:$0xff]  ;;  %v1257_v9 = vld [vmem:[#allocation2 + $0x8] sm:$0xff]  ;;  %v1260_v10 = vld [vmem:[#allocation2 + $0x10] sm:$0xff] }
  0x17   :  { %v1263_v11 = vld [vmem:[#allocation2 + $0x18] sm:$0xff]  ;;  %v1266_v12 = vld [vmem:[#allocation2 + $0x20] sm:$0xff]  ;;  %v985_v14 = vld [vmem:[#allocation7 + $0x30] sm:$0xff] }
  0x18   :  { %216 = vmatpush.bf16.msra.mxu0 %v977_v1  ;;  %v986_v13 = vld [vmem:[#allocation7 + $0x38] sm:$0xff]  ;;  %v1269_v15 = vld [vmem:[#allocation2 + $0x28] sm:$0xff]  ;;  %v983_v17 = vld [vmem:[#allocation7 + $0x20] sm:$0xff] }
  0x19   :  { %356 = vmatpush.bf16.msra.mxu1 %v986_v13  ;;  %v984_v16 = vld [vmem:[#allocation7 + $0x28] sm:$0xff]  ;;  %v982_v18 = vld [vmem:[#allocation7 + $0x18] sm:$0xff]  ;;  %v1272_v19 = vld [vmem:[#allocation2 + $0x30] sm:$0xff] }
  0x1a   :  { %v981_v20 = vld [vmem:[#allocation7 + $0x10] sm:$0xff]  ;;  %v980_v21 = vld [vmem:[#allocation7 + $0x8] sm:$0xff]  ;;  %v979_v22 = vld [vmem:[#allocation7] sm:$0xff] }
  0x1b   :  { %v1275_v23 = vld [vmem:[#allocation2 + $0x38] sm:$0xff]  ;;  %v1004_v1 = vld [vmem:[%s1475_s3] ss:$0 sm:$0xff] }
  0x1c   :  { %217 = vmatpush.bf16.msra.mxu0 %v976_v2 }
  0x1d   :  { %357 = vmatpush.bf16.msra.mxu1 %v985_v14 }
  0x20   :  { %218 = vmatpush.bf16.msra.mxu0 %v975_v3 }
  0x21   :  { %358 = vmatpush.bf16.msra.mxu1 %v984_v16 }
  0x24   :  { %219 = vmatpush.bf16.msra.mxu0 %v974_v4 }
  0x25   :  { %359 = vmatpush.bf16.msra.mxu1 %v983_v17 }
  0x28   :  { %220 = vmatpush.bf16.msra.mxu0 %v973_v5 }
  0x29   :  { %360 = vmatpush.bf16.msra.mxu1 %v982_v18 }
  0x2c   :  { %221 = vmatpush.bf16.msra.mxu0 %v972_v6 }
  0x2d   :  { %361 = vmatpush.bf16.msra.mxu1 %v981_v20 }
  0x30   :  { %222 = vmatpush.bf16.msra.mxu0 %v971_v7 }
  0x31   :  { %362 = vmatpush.bf16.msra.mxu1 %v980_v21 }
  0x33   :  { %223 = vmatmul.bf16.vlgmr.msra.gmra.mxu0 %v1254_v8 }
  0x35   :  { %363 = vmatpush.bf16.msra.mxu1 %v979_v22 }
  0x43   :  { %228 = vmatmul.bf16.gmra.mxu0 %v1257_v9 }
  0x53   :  { %233 = vmatmul.bf16.gmra.mxu0 %v1260_v10 }
  0x63   :  { %238 = vmatmul.bf16.gmra.mxu0 %v1263_v11 }
  0x73   :  { %243 = vmatmul.bf16.gmra.mxu0 %v1266_v12 }
  0x83   :  { %248 = vmatmul.bf16.gmra.mxu0 %v1269_v15 }
  0x93   :  { %253 = vmatmul.bf16.gmra.mxu0 %v1272_v19 }
  0xa3   :  { %258 = vmatmul.bf16.gmra.mxu0 %v1275_v23 }
  0xb0   :  { %v224_v24 = vpop.f32.mrf.mxu0 }
  0xb1   :  { %v264_v26 = vmax.f32 %v224_v24, 0.0 }
  0xb8   :  { %v226_v25 = vpop.f32.mrf.mxu0 }
  0xb9   :  { %v265_v27 = vmax.f32 %v226_v25, 0.0 }
  0xbb   :  { %v280_v28 = vpack.c.bf16 %v265_v27, %v264_v26 }
  0xbd   :  { %364 = vmatmul.bf16.vlgmr.msra.gmra.mxu1 %v280_v28 }
  0xc0   :  { %v229_v29 = vpop.f32.mrf.mxu0 }
  0xc1   :  { %v266_v31 = vmax.f32 %v229_v29, 0.0 }
  0xc8   :  { %v231_v30 = vpop.f32.mrf.mxu0 }
  0xc9   :  { %v267_v32 = vmax.f32 %v231_v30, 0.0 }
  0xcb   :  { %v281_v33 = vpack.c.bf16 %v267_v32, %v266_v31 }
  0xcd   :  { %369 = vmatmul.bf16.gmra.mxu1 %v281_v33 }
  0xd0   :  { %v234_v34 = vpop.f32.mrf.mxu0 }
  0xd1   :  { %v268_v36 = vmax.f32 %v234_v34, 0.0 }
  0xd8   :  { %v236_v35 = vpop.f32.mrf.mxu0 }
  0xd9   :  { %v269_v37 = vmax.f32 %v236_v35, 0.0 }
  0xdb   :  { %v282_v38 = vpack.c.bf16 %v269_v37, %v268_v36 }
  0xdd   :  { %374 = vmatmul.bf16.gmra.mxu1 %v282_v38 }
  0xe0   :  { %v239_v39 = vpop.f32.mrf.mxu0 }
  0xe1   :  { %v270_v41 = vmax.f32 %v239_v39, 0.0 }
  0xe8   :  { %v241_v40 = vpop.f32.mrf.mxu0 }
  0xe9   :  { %v271_v42 = vmax.f32 %v241_v40, 0.0 }
  0xeb   :  { %v283_v43 = vpack.c.bf16 %v271_v42, %v270_v41 }
  0xed   :  { %379 = vmatmul.bf16.gmra.mxu1 %v283_v43 }
  0xf0   :  { %v244_v44 = vpop.f32.mrf.mxu0 }
  0xf1   :  { %v272_v46 = vmax.f32 %v244_v44, 0.0 }
  0xf8   :  { %v246_v45 = vpop.f32.mrf.mxu0 }
  0xf9   :  { %v273_v47 = vmax.f32 %v246_v45, 0.0 }
  0xfb   :  { %v284_v48 = vpack.c.bf16 %v273_v47, %v272_v46 }
  0xfd   :  { %384 = vmatmul.bf16.gmra.mxu1 %v284_v48 }
 0x100   :  { %v249_v49 = vpop.f32.mrf.mxu0 }
 0x101   :  { %v274_v51 = vmax.f32 %v249_v49, 0.0 }
 0x108   :  { %v251_v50 = vpop.f32.mrf.mxu0 }
 0x109   :  { %v275_v52 = vmax.f32 %v251_v50, 0.0 }
 0x10b   :  { %v285_v53 = vpack.c.bf16 %v275_v52, %v274_v51 }
 0x10d   :  { %389 = vmatmul.bf16.gmra.mxu1 %v285_v53 }
 0x110   :  { %v254_v54 = vpop.f32.mrf.mxu0 }
 0x111   :  { %v276_v56 = vmax.f32 %v254_v54, 0.0 }
 0x118   :  { %v256_v55 = vpop.f32.mrf.mxu0 }
 0x119   :  { %v277_v57 = vmax.f32 %v256_v55, 0.0 }
 0x11b   :  { %v286_v58 = vpack.c.bf16 %v277_v57, %v276_v56 }
 0x11d   :  { %394 = vmatmul.bf16.gmra.mxu1 %v286_v58 }
 0x120   :  { %v259_v59 = vpop.f32.mrf.mxu0 }
 0x121   :  { %v278_v61 = vmax.f32 %v259_v59, 0.0 }
 0x128   :  { %v261_v60 = vpop.f32.mrf.mxu0 }
 0x129   :  { %v279_v62 = vmax.f32 %v261_v60, 0.0 }
 0x12b   :  { %v287_v63 = vpack.c.bf16 %v279_v62, %v278_v61 }
 0x12d   :  { %399 = vmatmul.bf16.gmra.mxu1 %v287_v63 }
 0x13a   :  { %v365_v0 = vpop.f32.mrf.mxu1 }
 0x13b   :  { %v366_v2 = vadd.f32 %v1004_v1, %v365_v0 }
 0x13d   :  { %v405_v5 = vmax.f32 %v366_v2, 0.0  ;;  %v993_v2 = vld [vmem:[#allocation8 + $0x30] sm:$0xff] }
 0x142   :  { %v367_v3 = vpop.f32.mrf.mxu1 }
 0x143   :  { %v368_v4 = vadd.f32 %v1004_v1, %v367_v3  ;;  %v992_v3 = vld [vmem:[#allocation8 + $0x28] sm:$0xff] }
 0x145   :  { %v406_v6 = vmax.f32 %v368_v4, 0.0  ;;  %v991_v4 = vld [vmem:[#allocation8 + $0x20] sm:$0xff] }
 0x147   :  { %v421_v7 = vpack.c.bf16 %v406_v6, %v405_v5  ;;  %v990_v5 = vld [vmem:[#allocation8 + $0x18] sm:$0xff] }
 0x14a   :  { %v370_v13 = vpop.f32.mrf.mxu1 }
 0x14b   :  { %v371_v14 = vadd.f32 %v1004_v1, %v370_v13 }
 0x14d   :  { %v407_v18 = vmax.f32 %v371_v14, 0.0 }
 0x152   :  { %v372_v16 = vpop.f32.mrf.mxu1 }
 0x153   :  { %v373_v17 = vadd.f32 %v1004_v1, %v372_v16 }
 0x155   :  { %v408_v20 = vmax.f32 %v373_v17, 0.0 }
 0x157   :  { %v422_v21 = vpack.c.bf16 %v408_v20, %v407_v18 }
 0x15a   :  { %v375_v22 = vpop.f32.mrf.mxu1 }
 0x15b   :  { %v376_v24 = vadd.f32 %v1004_v1, %v375_v22 }
 0x15d   :  { %v409_v27 = vmax.f32 %v376_v24, 0.0 }
 0x162   :  { %v377_v25 = vpop.f32.mrf.mxu1 }
 0x163   :  { %v378_v26 = vadd.f32 %v1004_v1, %v377_v25 }
 0x165   :  { %v410_v28 = vmax.f32 %v378_v26, 0.0 }
 0x167   :  { %v423_v29 = vpack.c.bf16 %v410_v28, %v409_v27 }
 0x16a   :  { %v380_v30 = vpop.f32.mrf.mxu1 }
 0x16b   :  { %v381_v31 = vadd.f32 %v1004_v1, %v380_v30 }
 0x16d   :  { %v411_v34 = vmax.f32 %v381_v31, 0.0 }
 0x172   :  { %v382_v32 = vpop.f32.mrf.mxu1 }
 0x173   :  { %v383_v33 = vadd.f32 %v1004_v1, %v382_v32 }
 0x175   :  { %v412_v35 = vmax.f32 %v383_v33, 0.0 }
 0x177   :  { %v424_v36 = vpack.c.bf16 %v412_v35, %v411_v34 }
 0x17a   :  { %v385_v37 = vpop.f32.mrf.mxu1 }
 0x17b   :  { %v386_v59 = vadd.f32 %v1004_v1, %v385_v37 }
 0x17d   :  { %v413_v63 = vmax.f32 %v386_v59, 0.0 }
 0x182   :  { %v387_v38 = vpop.f32.mrf.mxu1 }
 0x183   :  { %v388_v56 = vadd.f32 %v1004_v1, %v387_v38 }
 0x185   :  { %v414_v61 = vmax.f32 %v388_v56, 0.0 }
 0x187   :  { %v425_v0 = vpack.c.bf16 %v414_v61, %v413_v63 }
 0x18a   :  { %v390_v39 = vpop.f32.mrf.mxu1 }
 0x18b   :  { %v391_v54 = vadd.f32 %v1004_v1, %v390_v39 }
 0x18d   :  { %v415_v60 = vmax.f32 %v391_v54, 0.0 }
 0x192   :  { %v392_v40 = vpop.f32.mrf.mxu1 }
 0x193   :  { %v393_v51 = vadd.f32 %v1004_v1, %v392_v40 }
 0x195   :  { %v416_v57 = vmax.f32 %v393_v51, 0.0  ;;  %v1294_v51 = vld [vmem:[%s1477_s5] ss:$0 sm:$0xff]  ;;  %s1204_s5 = smov [#allocation10]  }
 0x196   :  { %s818_s18 = sshll.u32 %s1204_s5, 4  ;;  %s819_s18 = int_to_ptr.vmem [resolvable:$true] %s818_s18 }
 0x197   :  { %v426_v62 = vpack.c.bf16 %v416_v57, %v415_v60 }
 0x19a   :  { %v395_v41 = vpop.f32.mrf.mxu1 }
 0x19b   :  { %v396_v48 = vadd.f32 %v1004_v1, %v395_v41 }
 0x19d   :  { %v417_v55 = vmax.f32 %v396_v48, 0.0 }
 0x1a2   :  { %v397_v42 = vpop.f32.mrf.mxu1 }
 0x1a3   :  { %v398_v46 = vadd.f32 %v1004_v1, %v397_v42 }
 0x1a5   :  { %v418_v52 = vmax.f32 %v398_v46, 0.0 }
 0x1a7   :  { %v427_v58 = vpack.c.bf16 %v418_v52, %v417_v55 }
 0x1aa   :  { %v400_v43 = vpop.f32.mrf.mxu1 }
 0x1ab   :  { %v401_v44 = vadd.f32 %v1004_v1, %v400_v43 }
 0x1ad   :  { %v419_v49 = vmax.f32 %v401_v44, 0.0 }
 0x1b2   :  { %v402_v45 = vpop.f32.mrf.mxu1 }
 0x1b3   :  { %v403_v47 = vadd.f32 %v1004_v1, %v402_v45  ;;  %v994_v1 = vld [vmem:[#allocation8 + $0x38] sm:$0xff] }
 0x1b4   :  { %570 = vmatpush.bf16.msra.mxu3 %v994_v1 }
 0x1b5   :  { %v420_v50 = vmax.f32 %v403_v47, 0.0 }
 0x1b7   :  { %v428_v53 = vpack.c.bf16 %v420_v50, %v419_v49  ;;  %v619_v49 = vlaneseq }
 0x1b8   :  { %571 = vmatpush.bf16.msra.mxu3 %v993_v2 }
 0x1b9   :  { %429 = vmatpush.bf16.msra.mxu2 %v428_v53  ;;  %v1289_v50 = vand.u32 127, %v619_v49 }
 0x1bb   :  { %vm621_vm0 = vcmp.lt.s32.totalorder %v1289_v50, 8 }
 0x1bc   :  { %572 = vmatpush.bf16.msra.mxu3 %v992_v3 }
 0x1bd   :  { %430 = vmatpush.bf16.msra.mxu2 %v427_v58 }
 0x1c0   :  { %573 = vmatpush.bf16.msra.mxu3 %v991_v4 }
 0x1c1   :  { %431 = vmatpush.bf16.msra.mxu2 %v426_v62 }
 0x1c4   :  { %574 = vmatpush.bf16.msra.mxu3 %v990_v5 }
 0x1c5   :  { %432 = vmatpush.bf16.msra.mxu2 %v425_v0 }
 0x1c9   :  { %433 = vmatpush.bf16.msra.mxu2 %v424_v36 }
 0x1cd   :  { %434 = vmatpush.bf16.msra.mxu2 %v423_v29 }
 0x1d1   :  { %435 = vmatpush.bf16.msra.mxu2 %v422_v21 }
 0x1d5   :  { %436 = vmatpush.bf16.msra.mxu2 %v421_v7 }
 0x1d8   :  { %437 = vmatmul.bf16.vlgmr.msra.gmra.mxu2 %v1254_v8  ;;  %v989_v8 = vld [vmem:[#allocation8 + $0x10] sm:$0xff] }
 0x1d9   :  { %575 = vmatpush.bf16.msra.mxu3 %v989_v8 }
 0x1e8   :  { %442 = vmatmul.bf16.gmra.mxu2 %v1257_v9  ;;  %v988_v9 = vld [vmem:[#allocation8 + $0x8] sm:$0xff] }
 0x1e9   :  { %576 = vmatpush.bf16.msra.mxu3 %v988_v9 }
 0x1f8   :  { %447 = vmatmul.bf16.gmra.mxu2 %v1260_v10  ;;  %v987_v10 = vld [vmem:[#allocation8] sm:$0xff] }
 0x1f9   :  { %577 = vmatpush.bf16.msra.mxu3 %v987_v10 }
 0x208   :  { %452 = vmatmul.bf16.gmra.mxu2 %v1263_v11 }
 0x218   :  { %457 = vmatmul.bf16.gmra.mxu2 %v1266_v12 }
 0x228   :  { %462 = vmatmul.bf16.gmra.mxu2 %v1269_v15 }
 0x238   :  { %467 = vmatmul.bf16.gmra.mxu2 %v1272_v19 }
 0x248   :  { %472 = vmatmul.bf16.gmra.mxu2 %v1275_v23 }
 0x25b   :  { %v438_v11 = vpop.f32.mrf.mxu2 }
 0x25c   :  { %v478_v15 = vmax.f32 %v438_v11, 0.0 }
 0x263   :  { %v440_v12 = vpop.f32.mrf.mxu2 }
 0x264   :  { %v479_v6 = vmax.f32 %v440_v12, 0.0 }
 0x266   :  { %v494_v7 = vpack.c.bf16 %v479_v6, %v478_v15 }
 0x268   :  { %578 = vmatmul.bf16.vlgmr.msra.gmra.mxu3 %v494_v7 }
 0x26b   :  { %v443_v13 = vpop.f32.mrf.mxu2 }
 0x26c   :  { %v480_v16 = vmax.f32 %v443_v13, 0.0 }
 0x273   :  { %v445_v14 = vpop.f32.mrf.mxu2 }
 0x274   :  { %v481_v17 = vmax.f32 %v445_v14, 0.0 }
 0x276   :  { %v495_v19 = vpack.c.bf16 %v481_v17, %v480_v16 }
 0x278   :  { %583 = vmatmul.bf16.gmra.mxu3 %v495_v19 }
 0x27b   :  { %v448_v18 = vpop.f32.mrf.mxu2 }
 0x27c   :  { %v482_v21 = vmax.f32 %v448_v18, 0.0 }
 0x283   :  { %v450_v20 = vpop.f32.mrf.mxu2 }
 0x284   :  { %v483_v22 = vmax.f32 %v450_v20, 0.0 }
 0x286   :  { %v496_v24 = vpack.c.bf16 %v483_v22, %v482_v21 }
 0x288   :  { %588 = vmatmul.bf16.gmra.mxu3 %v496_v24 }
 0x28b   :  { %v453_v25 = vpop.f32.mrf.mxu2 }
 0x28c   :  { %v484_v26 = vmax.f32 %v453_v25, 0.0 }
 0x293   :  { %v455_v23 = vpop.f32.mrf.mxu2 }
 0x294   :  { %v485_v27 = vmax.f32 %v455_v23, 0.0 }
 0x296   :  { %v497_v28 = vpack.c.bf16 %v485_v27, %v484_v26 }
 0x298   :  { %593 = vmatmul.bf16.gmra.mxu3 %v497_v28 }
 0x29b   :  { %v458_v29 = vpop.f32.mrf.mxu2 }
 0x29c   :  { %v486_v31 = vmax.f32 %v458_v29, 0.0 }
 0x2a3   :  { %v460_v30 = vpop.f32.mrf.mxu2 }
 0x2a4   :  { %v487_v32 = vmax.f32 %v460_v30, 0.0 }
 0x2a6   :  { %v498_v33 = vpack.c.bf16 %v487_v32, %v486_v31 }
 0x2a8   :  { %598 = vmatmul.bf16.gmra.mxu3 %v498_v33 }
 0x2ab   :  { %v463_v34 = vpop.f32.mrf.mxu2 }
 0x2ac   :  { %v488_v36 = vmax.f32 %v463_v34, 0.0 }
 0x2b3   :  { %v465_v35 = vpop.f32.mrf.mxu2 }
 0x2b4   :  { %v489_v37 = vmax.f32 %v465_v35, 0.0 }
 0x2b6   :  { %v499_v38 = vpack.c.bf16 %v489_v37, %v488_v36 }
 0x2b8   :  { %603 = vmatmul.bf16.gmra.mxu3 %v499_v38 }
 0x2bb   :  { %v468_v39 = vpop.f32.mrf.mxu2 }
 0x2bc   :  { %v490_v41 = vmax.f32 %v468_v39, 0.0 }
 0x2c3   :  { %v470_v40 = vpop.f32.mrf.mxu2 }
 0x2c4   :  { %v491_v42 = vmax.f32 %v470_v40, 0.0 }
 0x2c6   :  { %v500_v43 = vpack.c.bf16 %v491_v42, %v490_v41 }
 0x2c8   :  { %608 = vmatmul.bf16.gmra.mxu3 %v500_v43 }
 0x2cb   :  { %v473_v44 = vpop.f32.mrf.mxu2 }
 0x2cc   :  { %v492_v46 = vmax.f32 %v473_v44, 0.0 }
 0x2d3   :  { %v475_v45 = vpop.f32.mrf.mxu2 }
 0x2d4   :  { %v493_v47 = vmax.f32 %v475_v45, 0.0 }
 0x2d6   :  { %v501_v48 = vpack.c.bf16 %v493_v47, %v492_v46 }
 0x2d8   :  { %613 = vmatmul.bf16.gmra.mxu3 %v501_v48 }
 0x2eb   :  { %v579_v52 = vpop.f32.mrf.mxu3 }
 0x2ec   :  { %v580_v53 = vadd.f32 %v1294_v51, %v579_v52 }
 0x2ee   :  { %v622_v54 = vsel %vm621_vm0, %v580_v53, -1e+30 }
 0x2ef   :  { %638 = vmax.xlane.f32.xlu0 %v622_v54 }
 0x2f3   :  { %v581_v55 = vpop.f32.mrf.mxu3 }
 0x2f4   :  { %v582_v56 = vadd.f32 %v1294_v51, %v581_v55 }
 0x2f6   :  { %v1303_v57 = vsel %vm621_vm0, %v582_v56, -1e+30 }
 0x2f7   :  { %640 = vmax.xlane.f32.xlu0 %v1303_v57 }
 0x2fb   :  { %v584_v58 = vpop.f32.mrf.mxu3 }
 0x2fc   :  { %v585_v59 = vadd.f32 %v1294_v51, %v584_v58 }
 0x2fe   :  { %v1309_v60 = vsel %vm621_vm0, %v585_v59, -1e+30 }
 0x2ff   :  { %642 = vmax.xlane.f32.xlu1 %v1309_v60 }
 0x303   :  { %v586_v61 = vpop.f32.mrf.mxu3 }
 0x304   :  { %v587_v62 = vadd.f32 %v1294_v51, %v586_v61 }
 0x306   :  { %v1315_v63 = vsel %vm621_vm0, %v587_v62, -1e+30 }
 0x307   :  { %644 = vmax.xlane.f32.xlu1 %v1315_v63 }
 0x30b   :  { %v589_v0 = vpop.f32.mrf.mxu3 }
 0x30c   :  { %v590_v1 = vadd.f32 %v1294_v51, %v589_v0 }
 0x30e   :  { %v1321_v2 = vsel %vm621_vm0, %v590_v1, -1e+30 }
 0x30f   :  { %646 = vmax.xlane.f32.xlu2 %v1321_v2 }
 0x313   :  { %v591_v3 = vpop.f32.mrf.mxu3 }
 0x314   :  { %v592_v4 = vadd.f32 %v1294_v51, %v591_v3 }
 0x316   :  { %v1327_v5 = vsel %vm621_vm0, %v592_v4, -1e+30 }
 0x317   :  { %648 = vmax.xlane.f32.xlu2 %v1327_v5 }
 0x31b   :  { %v594_v8 = vpop.f32.mrf.mxu3 }
 0x31c   :  { %v595_v9 = vadd.f32 %v1294_v51, %v594_v8 }
 0x31e   :  { %v1333_v10 = vsel %vm621_vm0, %v595_v9, -1e+30 }
 0x31f   :  { %650 = vmax.xlane.f32.xlu0 %v1333_v10 }
 0x323   :  { %v596_v11 = vpop.f32.mrf.mxu3 }
 0x324   :  { %v597_v12 = vadd.f32 %v1294_v51, %v596_v11 }
 0x326   :  { %v1339_v15 = vsel %vm621_vm0, %v597_v12, -1e+30 }
 0x327   :  { %652 = vmax.xlane.f32.xlu1 %v1339_v15 }
 0x32b   :  { %v599_v6 = vpop.f32.mrf.mxu3 }
 0x32c   :  { %v600_v7 = vadd.f32 %v1294_v51, %v599_v6 }
 0x32e   :  { %v1345_v13 = vsel %vm621_vm0, %v600_v7, -1e+30 }
 0x32f   :  { %654 = vmax.xlane.f32.xlu2 %v1345_v13 }
 0x333   :  { %v601_v14 = vpop.f32.mrf.mxu3 }
 0x334   :  { %v602_v16 = vadd.f32 %v1294_v51, %v601_v14 }
 0x336   :  { %v1351_v17 = vsel %vm621_vm0, %v602_v16, -1e+30 }
 0x337   :  { %656 = vmax.xlane.f32.xlu0 %v1351_v17 }
 0x33b   :  { %v604_v19 = vpop.f32.mrf.mxu3 }
 0x33c   :  { %v605_v18 = vadd.f32 %v1294_v51, %v604_v19 }
 0x33e   :  { %v1357_v20 = vsel %vm621_vm0, %v605_v18, -1e+30 }
 0x33f   :  { %658 = vmax.xlane.f32.xlu1 %v1357_v20 }
 0x343   :  { %v606_v21 = vpop.f32.mrf.mxu3 }
 0x344   :  { %v607_v22 = vadd.f32 %v1294_v51, %v606_v21 }
 0x346   :  { %v1363_v24 = vsel %vm621_vm0, %v607_v22, -1e+30 }
 0x347   :  { %660 = vmax.xlane.f32.xlu2 %v1363_v24 }
 0x34b   :  { %v609_v25 = vpop.f32.mrf.mxu3 }
 0x34c   :  { %v610_v23 = vadd.f32 %v1294_v51, %v609_v25 }
 0x34e   :  { %v1369_v26 = vsel %vm621_vm0, %v610_v23, -1e+30 }
 0x34f   :  { %662 = vmax.xlane.f32.xlu0 %v1369_v26 }
 0x353   :  { %v611_v27 = vpop.f32.mrf.mxu3 }
 0x354   :  { %v612_v28 = vadd.f32 %v1294_v51, %v611_v27 }
 0x356   :  { %v1375_v29 = vsel %vm621_vm0, %v612_v28, -1e+30 }
 0x357   :  { %664 = vmax.xlane.f32.xlu1 %v1375_v29 }
 0x35b   :  { %v614_v30 = vpop.f32.mrf.mxu3 }
 0x35c   :  { %v615_v31 = vadd.f32 %v1294_v51, %v614_v30 }
 0x35e   :  { %v1381_v32 = vsel %vm621_vm0, %v615_v31, -1e+30 }
 0x35f   :  { %666 = vmax.xlane.f32.xlu2 %v1381_v32 }
 0x362   :  { %v639_v33 = vpop.xlane.xlu0 %638 }
 0x363   :  { %v1384_v34 = vsub.f32 %v622_v54, %v639_v33  ;;  %v616_v35 = vpop.f32.mrf.mxu3 }
 0x364   :  { %v617_v36 = vadd.f32 %v1294_v51, %v616_v35 }
 0x365   :  { %v686_v37 = vmul.f32 1.442695, %v1384_v34 }
 0x366   :  { %v1390_v38 = vsel %vm621_vm0, %v617_v36, -1e+30 }
 0x367   :  { %1006 = vpow2.f32 %v686_v37  ;;  %668 = vmax.xlane.f32.xlu0 %v1390_v38 }
 0x36a   :  { %v641_v39 = vpop.xlane.xlu0 %640 }
 0x36b   :  { %v1394_v40 = vsub.f32 %v1303_v57, %v641_v39 }
 0x36d   :  { %v1007_v41 = vpop.eup %1006  ;;  %v688_v42 = vmul.f32 1.442695, %v1394_v40 }
 0x36e   :  { %718 = vadd.xlane.f32.xlu1 %v1007_v41 }
 0x36f   :  { %1008 = vpow2.f32 %v688_v42 }
 0x372   :  { %v643_v43 = vpop.xlane.xlu1 %642 }
 0x373   :  { %v1398_v44 = vsub.f32 %v1309_v60, %v643_v43 }
 0x375   :  { %v1009_v45 = vpop.eup %1008  ;;  %v690_v46 = vmul.f32 1.442695, %v1398_v44 }
 0x376   :  { %720 = vadd.xlane.f32.xlu2 %v1009_v45 }
 0x377   :  { %1010 = vpow2.f32 %v690_v46 }
 0x37a   :  { %v645_v47 = vpop.xlane.xlu1 %644 }
 0x37b   :  { %v1402_v48 = vsub.f32 %v1315_v63, %v645_v47 }
 0x37d   :  { %v1011_v49 = vpop.eup %1010  ;;  %v692_v50 = vmul.f32 1.442695, %v1402_v48 }
 0x37e   :  { %722 = vadd.xlane.f32.xlu0 %v1011_v49 }
 0x37f   :  { %1012 = vpow2.f32 %v692_v50 }
 0x382   :  { %v647_v51 = vpop.xlane.xlu2 %646 }
 0x383   :  { %v1406_v52 = vsub.f32 %v1321_v2, %v647_v51 }
 0x385   :  { %v1013_v53 = vpop.eup %1012  ;;  %v694_v54 = vmul.f32 1.442695, %v1406_v52 }
 0x386   :  { %724 = vadd.xlane.f32.xlu1 %v1013_v53 }
 0x387   :  { %1014 = vpow2.f32 %v694_v54 }
 0x38a   :  { %v649_v55 = vpop.xlane.xlu2 %648 }
 0x38b   :  { %v1410_v56 = vsub.f32 %v1327_v5, %v649_v55 }
 0x38d   :  { %v1015_v57 = vpop.eup %1014  ;;  %v696_v58 = vmul.f32 1.442695, %v1410_v56 }
 0x38e   :  { %726 = vadd.xlane.f32.xlu2 %v1015_v57 }
 0x38f   :  { %1016 = vpow2.f32 %v696_v58 }
 0x392   :  { %v651_v59 = vpop.xlane.xlu0 %650 }
 0x393   :  { %v1414_v60 = vsub.f32 %v1333_v10, %v651_v59 }
 0x395   :  { %v1017_v61 = vpop.eup %1016  ;;  %v698_v62 = vmul.f32 1.442695, %v1414_v60 }
 0x396   :  { %728 = vadd.xlane.f32.xlu0 %v1017_v61 }
 0x397   :  { %1018 = vpow2.f32 %v698_v62 }
 0x39a   :  { %v653_v63 = vpop.xlane.xlu1 %652 }
 0x39b   :  { %v1418_v0 = vsub.f32 %v1339_v15, %v653_v63 }
 0x39d   :  { %v1019_v1 = vpop.eup %1018  ;;  %v700_v2 = vmul.f32 1.442695, %v1418_v0 }
 0x39e   :  { %730 = vadd.xlane.f32.xlu1 %v1019_v1 }
 0x39f   :  { %1020 = vpow2.f32 %v700_v2 }
 0x3a2   :  { %v655_v3 = vpop.xlane.xlu2 %654 }
 0x3a3   :  { %v1422_v4 = vsub.f32 %v1345_v13, %v655_v3 }
 0x3a5   :  { %v1021_v5 = vpop.eup %1020  ;;  %v702_v8 = vmul.f32 1.442695, %v1422_v4 }
 0x3a6   :  { %732 = vadd.xlane.f32.xlu2 %v1021_v5 }
 0x3a7   :  { %1022 = vpow2.f32 %v702_v8 }
 0x3aa   :  { %v657_v9 = vpop.xlane.xlu0 %656 }
 0x3ab   :  { %v1426_v10 = vsub.f32 %v1351_v17, %v657_v9 }
 0x3ad   :  { %v1023_v11 = vpop.eup %1022  ;;  %v704_v12 = vmul.f32 1.442695, %v1426_v10 }
 0x3ae   :  { %734 = vadd.xlane.f32.xlu0 %v1023_v11 }
 0x3af   :  { %1024 = vpow2.f32 %v704_v12 }
 0x3b2   :  { %v659_v15 = vpop.xlane.xlu1 %658 }
 0x3b3   :  { %v1430_v6 = vsub.f32 %v1357_v20, %v659_v15 }
 0x3b5   :  { %v1025_v7 = vpop.eup %1024  ;;  %v706_v13 = vmul.f32 1.442695, %v1430_v6 }
 0x3b6   :  { %736 = vadd.xlane.f32.xlu1 %v1025_v7 }
 0x3b7   :  { %1026 = vpow2.f32 %v706_v13 }
 0x3ba   :  { %v661_v14 = vpop.xlane.xlu2 %660 }
 0x3bb   :  { %v1434_v16 = vsub.f32 %v1363_v24, %v661_v14 }
 0x3bd   :  { %v1027_v17 = vpop.eup %1026  ;;  %v708_v19 = vmul.f32 1.442695, %v1434_v16 }
 0x3be   :  { %738 = vadd.xlane.f32.xlu2 %v1027_v17 }
 0x3bf   :  { %1028 = vpow2.f32 %v708_v19 }
 0x3c2   :  { %v663_v18 = vpop.xlane.xlu0 %662 }
 0x3c3   :  { %v1438_v21 = vsub.f32 %v1369_v26, %v663_v18 }
 0x3c5   :  { %v1029_v20 = vpop.eup %1028  ;;  %v710_v22 = vmul.f32 1.442695, %v1438_v21 }
 0x3c6   :  { %740 = vadd.xlane.f32.xlu0 %v1029_v20 }
 0x3c7   :  { %1030 = vpow2.f32 %v710_v22 }
 0x3ca   :  { %v665_v25 = vpop.xlane.xlu1 %664 }
 0x3cb   :  { %v1442_v23 = vsub.f32 %v1375_v29, %v665_v25 }
 0x3cd   :  { %v1031_v24 = vpop.eup %1030  ;;  %v712_v27 = vmul.f32 1.442695, %v1442_v23 }
 0x3ce   :  { %742 = vadd.xlane.f32.xlu1 %v1031_v24 }
 0x3cf   :  { %1032 = vpow2.f32 %v712_v27 }
 0x3d2   :  { %v667_v28 = vpop.xlane.xlu2 %666 }
 0x3d3   :  { %v1446_v30 = vsub.f32 %v1381_v32, %v667_v28 }
 0x3d5   :  { %v1033_v26 = vpop.eup %1032  ;;  %v714_v31 = vmul.f32 1.442695, %v1446_v30 }
 0x3d6   :  { %744 = vadd.xlane.f32.xlu2 %v1033_v26 }
 0x3d7   :  { %1034 = vpow2.f32 %v714_v31 }
 0x3da   :  { %v669_v33 = vpop.xlane.xlu0 %668 }
 0x3db   :  { %v1450_v35 = vsub.f32 %v1390_v38, %v669_v33 }
 0x3dd   :  { %v1035_v29 = vpop.eup %1034  ;;  %v716_v36 = vmul.f32 1.442695, %v1450_v35 }
 0x3de   :  { %746 = vadd.xlane.f32.xlu0 %v1035_v29 }
 0x3df   :  { %1036 = vpow2.f32 %v716_v36 }
 0x3e1   :  { %v719_v37 = vpop.xlane.xlu1 %718 }
 0x3e2   :  { %1038 = vlog2.f32 %v719_v37 }
 0x3e5   :  { %v1037_v39 = vpop.eup %1036 }
 0x3e6   :  { %748 = vadd.xlane.f32.xlu1 %v1037_v39 }
 0x3e8   :  { %v1039_v32 = vpop.eup %1038 }
 0x3e9   :  { %v751_v41 = vmul.f32 0.6931472, %v1039_v32  ;;  %v721_v42 = vpop.xlane.xlu2 %720 }
 0x3ea   :  { %1040 = vlog2.f32 %v721_v42 }
 0x3eb   :  { %v782_v43 = vsub.f32 %v1384_v34, %v751_v41 }
 0x3ed   :  { %798 = vst [vmem:[#allocation10] sm:$0xff] %v782_v43 }
 0x3f0   :  { %v1041_v45 = vpop.eup %1040 }
 0x3f1   :  { %v753_v46 = vmul.f32 0.6931472, %v1041_v45  ;;  %v723_v38 = vpop.xlane.xlu0 %722 }
 0x3f2   :  { %1042 = vlog2.f32 %v723_v38 }
 0x3f3   :  { %v783_v47 = vsub.f32 %v1394_v40, %v753_v46 }
 0x3f5   :  { %799 = vst [vmem:[#allocation10 + $0x8] sm:$0xff] %v783_v47 }
 0x3f8   :  { %v1043_v49 = vpop.eup %1042 }
 0x3f9   :  { %v755_v50 = vmul.f32 0.6931472, %v1043_v49  ;;  %v725_v51 = vpop.xlane.xlu1 %724 }
 0x3fa   :  { %1044 = vlog2.f32 %v725_v51 }
 0x3fb   :  { %v784_v53 = vsub.f32 %v1398_v44, %v755_v50 }
 0x3fd   :  { %800 = vst [vmem:[#allocation10 + $0x10] sm:$0xff] %v784_v53 }
 0x400   :  { %v1045_v54 = vpop.eup %1044 }
 0x401   :  { %v757_v55 = vmul.f32 0.6931472, %v1045_v54  ;;  %v727_v57 = vpop.xlane.xlu2 %726 }
 0x402   :  { %1046 = vlog2.f32 %v727_v57 }
 0x403   :  { %v785_v34 = vsub.f32 %v1402_v48, %v757_v55 }
 0x405   :  { %801 = vst [vmem:[#allocation10 + $0x18] sm:$0xff] %v785_v34 }
 0x408   :  { %v1047_v58 = vpop.eup %1046 }
 0x409   :  { %v759_v59 = vmul.f32 0.6931472, %v1047_v58  ;;  %v729_v61 = vpop.xlane.xlu0 %728 }
 0x40a   :  { %1048 = vlog2.f32 %v729_v61 }
 0x40b   :  { %v786_v40 = vsub.f32 %v1406_v52, %v759_v59 }
 0x40d   :  { %802 = vst [vmem:[#allocation10 + $0x20] sm:$0xff] %v786_v40 }
 0x410   :  { %v1049_v62 = vpop.eup %1048 }
 0x411   :  { %v761_v63 = vmul.f32 0.6931472, %v1049_v62  ;;  %v731_v1 = vpop.xlane.xlu1 %730 }
 0x412   :  { %1050 = vlog2.f32 %v731_v1 }
 0x413   :  { %v787_v44 = vsub.f32 %v1410_v56, %v761_v63 }
 0x415   :  { %803 = vst [vmem:[#allocation10 + $0x28] sm:$0xff] %v787_v44 }
 0x418   :  { %v1051_v2 = vpop.eup %1050 }
 0x419   :  { %v763_v3 = vmul.f32 0.6931472, %v1051_v2  ;;  %v733_v5 = vpop.xlane.xlu2 %732 }
 0x41a   :  { %1052 = vlog2.f32 %v733_v5 }
 0x41b   :  { %v788_v48 = vsub.f32 %v1414_v60, %v763_v3 }
 0x41d   :  { %804 = vst [vmem:[#allocation10 + $0x30] sm:$0xff] %v788_v48 }
 0x420   :  { %v1053_v8 = vpop.eup %1052 }
 0x421   :  { %v765_v9 = vmul.f32 0.6931472, %v1053_v8  ;;  %v735_v11 = vpop.xlane.xlu0 %734 }
 0x422   :  { %1054 = vlog2.f32 %v735_v11 }
 0x423   :  { %v789_v52 = vsub.f32 %v1418_v0, %v765_v9 }
 0x425   :  { %805 = vst [vmem:[#allocation10 + $0x38] sm:$0xff] %v789_v52 }
 0x428   :  { %v1055_v12 = vpop.eup %1054 }
 0x429   :  { %v767_v15 = vmul.f32 0.6931472, %v1055_v12  ;;  %v737_v7 = vpop.xlane.xlu1 %736 }
 0x42a   :  { %1056 = vlog2.f32 %v737_v7 }
 0x42b   :  { %v790_v56 = vsub.f32 %v1422_v4, %v767_v15 }
 0x42d   :  { %806 = vst [vmem:[#allocation10 + $0x40] sm:$0xff] %v790_v56 }
 0x430   :  { %v1057_v13 = vpop.eup %1056 }
 0x431   :  { %v769_v14 = vmul.f32 0.6931472, %v1057_v13  ;;  %v739_v17 = vpop.xlane.xlu2 %738 }
 0x432   :  { %1058 = vlog2.f32 %v739_v17 }
 0x433   :  { %v791_v60 = vsub.f32 %v1426_v10, %v769_v14 }
 0x435   :  { %807 = vst [vmem:[#allocation10 + $0x48] sm:$0xff] %v791_v60 }
 0x438   :  { %v1059_v19 = vpop.eup %1058 }
 0x439   :  { %v771_v18 = vmul.f32 0.6931472, %v1059_v19  ;;  %v741_v20 = vpop.xlane.xlu0 %740 }
 0x43a   :  { %1060 = vlog2.f32 %v741_v20 }
 0x43b   :  { %v792_v0 = vsub.f32 %v1430_v6, %v771_v18 }
 0x43d   :  { %808 = vst [vmem:[#allocation10 + $0x50] sm:$0xff] %v792_v0 }
 0x440   :  { %v1061_v22 = vpop.eup %1060 }
 0x441   :  { %v773_v25 = vmul.f32 0.6931472, %v1061_v22  ;;  %v743_v24 = vpop.xlane.xlu1 %742 }
 0x442   :  { %1062 = vlog2.f32 %v743_v24 }
 0x443   :  { %v793_v4 = vsub.f32 %v1434_v16, %v773_v25 }
 0x445   :  { %809 = vst [vmem:[#allocation10 + $0x58] sm:$0xff] %v793_v4 }
 0x448   :  { %v1063_v27 = vpop.eup %1062 }
 0x449   :  { %v775_v28 = vmul.f32 0.6931472, %v1063_v27  ;;  %v745_v26 = vpop.xlane.xlu2 %744 }
 0x44a   :  { %1064 = vlog2.f32 %v745_v26 }
 0x44b   :  { %v794_v10 = vsub.f32 %v1438_v21, %v775_v28 }
 0x44d   :  { %810 = vst [vmem:[#allocation10 + $0x60] sm:$0xff] %v794_v10 }
 0x450   :  { %v1065_v31 = vpop.eup %1064 }
 0x451   :  { %v777_v33 = vmul.f32 0.6931472, %v1065_v31  ;;  %v747_v29 = vpop.xlane.xlu0 %746 }
 0x452   :  { %1066 = vlog2.f32 %v747_v29 }
 0x453   :  { %v795_v6 = vsub.f32 %v1442_v23, %v777_v33 }
 0x455   :  { %811 = vst [vmem:[#allocation10 + $0x68] sm:$0xff] %v795_v6 }
 0x458   :  { %v1067_v36 = vpop.eup %1066 }
 0x459   :  { %v779_v37 = vmul.f32 0.6931472, %v1067_v36  ;;  %v749_v39 = vpop.xlane.xlu1 %748 }
 0x45a   :  { %1068 = vlog2.f32 %v749_v39 }
 0x45b   :  { %v796_v16 = vsub.f32 %v1446_v30, %v779_v37 }
 0x45d   :  { %812 = vst [vmem:[#allocation10 + $0x70] sm:$0xff] %v796_v16 }
 0x460   :  { %v1069_v21 = vpop.eup %1068 }
 0x461   :  { %v781_v32 = vmul.f32 0.6931472, %v1069_v21 }
 0x463   :  { %v797_v23 = vsub.f32 %v1450_v35, %v781_v32 }
 0x465   :  { %813 = vst [vmem:[#allocation10 + $0x78] sm:$0xff] %v797_v23 }
 0x466   :  { %826 = dma.vmem_to_hbm [thread:$0]  %s819_s18, 2048, %s821_s21, [#allocation4], %s1205_s22, %s1205_s22, %s1206_s23  }
 0x467   :  { %1196 = dma.done.wait [#allocation4], 2048  }
 0x468   :  { %1197 = vsyncadd [#allocation4], 4294965248 }
 0x469   :  { %831 = vsyncpa [#allocation3], 1 }
 0x46a   :  { %832 = vsyncpa [#allocation6], 1 }
 0x46b   :  { %833 = vsyncpa [#allocation9], 1 }
 0x46c   :  { %834 = vsyncpa [#allocation4], 1 }

</bundles_post_ra>
